<compile_context>
chip_gen: v7x
topology: tpu7x:2x2x1
jax: 0.10.0
libtpu: 0.0.40
codegen_flags: <defaults>
</compile_context>

<pallas_src>
import functools

import jax
import jax.numpy as jnp
import numpy as np
from jax import lax
from jax.experimental import pallas as pl
from jax.experimental.pallas import tpu as pltpu

ID_PAD = 128      # padded id range for the one-hot gather (user/item ids < 128)
LOGIT_PAD = 128   # sublane-padded logit rows; real logits live in rows 0..1


def _round_up(x, m):
    return (x + m - 1) // m * m


def _choose_tile(batch, tile_b):
    """Batch tile (lane dim) and padded batch size; both multiples of 128."""
    bp = _round_up(max(batch, 1), 128)
    tb = max(128, min(_round_up(tile_b, 128), bp))
    if tb >= bp and bp >= 256:
        # Keep >= 2 grid steps so the "parallel" batch axis can shard across
        # both TensorCores on v7x (v5e/v6e single-TC: harmless).
        tb = _round_up(bp // 2, 128)
    bp = _round_up(bp, tb)
    return tb, bp


def ncf_kernel(uid_ref, iid_ref, tu_ref, ti_ref, b1_ref, w2_ref, b2_ref,
               w3_ref, b3_ref, wp_ref, bp_ref, out_ref):
    tb = uid_ref.shape[1]          # batch tile (lane axis)
    idp = tu_ref.shape[1]          # 128: padded id range
    dm = tu_ref.shape[0] // 2      # 128: MLP hidden width

    # One sublane iota reused for both one-hot compares (JAX does not CSE iota).
    row_iota = lax.broadcasted_iota(jnp.int32, (idp, tb), 0)
    oh_u = (uid_ref[...] == row_iota).astype(jnp.bfloat16)    # (128, tb)
    oh_i = (iid_ref[...] == row_iota).astype(jnp.bfloat16)    # (128, tb)

    # Fused gather + layer-1: tables are [W1_half @ E_mlp^T ; E_gmf^T] feature-
    # major, so one K=128 matmul per id stream yields both the layer-1 partial
    # sums (rows 0..127) and the GMF embedding (rows 128..255, data in 128..159).
    r_u = jnp.dot(tu_ref[...], oh_u, preferred_element_type=jnp.float32)  # (256, tb)
    r_i = jnp.dot(ti_ref[...], oh_i, preferred_element_type=jnp.float32)  # (256, tb)

    h = jnp.maximum(r_u[:dm, :] + r_i[:dm, :] + b1_ref[...], 0.0)         # (128, tb)
    gmf = r_u[dm:, :] * r_i[dm:, :]     # (128, tb) f32, data in sublanes 0..31

    h = h.astype(jnp.bfloat16)
    h = jnp.maximum(jnp.dot(w2_ref[...], h, preferred_element_type=jnp.float32)
                    + b2_ref[...], 0.0).astype(jnp.bfloat16)              # (64, tb)
    # w3 slab is padded so its relu'd output lands in sublanes 32..63,
    # disjoint from GMF's sublanes 0..31.
    h3 = jnp.maximum(jnp.dot(w3_ref[...], h, preferred_element_type=jnp.float32)
                     + b3_ref[...], 0.0)                                  # (128, tb)

    # Packed predict: [gmf | mlp] occupy disjoint sublanes of one 128-row slab,
    # so a single K=128 matmul replaces the two split predict matmuls.
    feat = (gmf + h3).astype(jnp.bfloat16)                                # (128, tb)
    out = jnp.dot(wp_ref[...], feat, preferred_element_type=jnp.float32) + bp_ref[...]
    out_ref[...] = out.astype(out_ref.dtype)                              # (128, tb) bf16


@functools.partial(jax.jit, static_argnames=("tile_b",))
def ncf_forward(user_ids, item_ids, params, tile_b=1024):
    B = user_ids.shape[0]
    tb, Bp = _choose_tile(B, tile_b)

    # Lane-dense id streams: (1, Bp) int32, tiled (1, tb) per grid step.
    # (Padded tail columns reuse id 0; their logits are sliced off below.)
    uid = jnp.zeros((1, Bp), jnp.int32).at[0, :B].set(user_ids.astype(jnp.int32))
    iid = jnp.zeros((1, Bp), jnp.int32).at[0, :B].set(item_ids.astype(jnp.int32))

    resident_args = (params["tu"], params["ti"], params["b1"], params["w2"],
                     params["b2"], params["w3"], params["b3"], params["wp"],
                     params["bp"])

    def resident_spec(x):
        # Full-array block, same block index every grid step -> stays in VMEM.
        return pl.BlockSpec(x.shape, lambda i: (0, 0))

    dm = params["tu"].shape[0] // 2
    idp = params["tu"].shape[1]
    flops_per_row = 2 * (2 * idp * 2 * dm          # fused gather+layer1 (2 streams)
                         + dm * (dm // 2)          # layer 2
                         + (dm // 2) * dm          # layer 3 (padded slab)
                         + dm * LOGIT_PAD)         # packed predict
    bytes_accessed = (uid.size * 4 + iid.size * 4 + LOGIT_PAD * Bp * 2
                      + sum(int(x.size) * x.dtype.itemsize for x in resident_args))

    out = pl.pallas_call(
        ncf_kernel,
        out_shape=jax.ShapeDtypeStruct((LOGIT_PAD, Bp), jnp.bfloat16),
        grid_spec=pltpu.PrefetchScalarGridSpec(
            num_scalar_prefetch=0,
            grid=(Bp // tb,),
            in_specs=[pl.BlockSpec((1, tb), lambda i: (0, i)),   # user ids
                      pl.BlockSpec((1, tb), lambda i: (0, i))]   # item ids
                     + [resident_spec(x) for x in resident_args],
            out_specs=pl.BlockSpec((LOGIT_PAD, tb), lambda i: (0, i)),
        ),
        compiler_params=pltpu.CompilerParams(
            dimension_semantics=("parallel",),
            vmem_limit_bytes=48 * 1024 * 1024),   # capped for v7x's 64 MiB VMEM
        cost_estimate=pl.CostEstimate(
            flops=Bp * flops_per_row,
            transcendentals=0,
            bytes_accessed=bytes_accessed),
    )(uid, iid, *resident_args)

    return out[:2, :B].T.astype(jnp.float32)      # (B, 2) f32 logits


def init_params(key, user_num=50, item_num=60, factor_num=32, num_layers=3):
    if user_num > ID_PAD or item_num > ID_PAD:
        raise ValueError("one-hot gather scheme assumes user_num/item_num <= 128")
    mlp_dim = factor_num * 2 ** (num_layers - 1)            # 128
    assert num_layers == 3 and factor_num == 32 and mlp_dim == 128, \
        "fused slab layout is baked for the module's 32/3 NeuMF config"

    ks = jax.random.split(key, 8)

    def normal(k, shape):
        return 0.01 * jax.random.normal(k, shape, jnp.float32)

    def xavier(k, shape):                                    # torch (out, in)
        fan_out, fan_in = shape
        limit = (6.0 / (fan_in + fan_out)) ** 0.5
        return jax.random.uniform(k, shape, jnp.float32, -limit, limit)

    def kaiming_sigmoid(k, shape):
        # kaiming_uniform_(a=1, nonlinearity='sigmoid') -> gain=1, bound=sqrt(3/fan_in)
        bound = (3.0 / shape[1]) ** 0.5
        return jax.random.uniform(k, shape, jnp.float32, -bound, bound)

    tug = normal(ks[0], (user_num, factor_num))
    tig = normal(ks[1], (item_num, factor_num))
    tum = normal(ks[2], (user_num, mlp_dim))
    tim = normal(ks[3], (item_num, mlp_dim))
    W1 = xavier(ks[4], (mlp_dim, 2 * mlp_dim))               # (128, 256)
    W2 = xavier(ks[5], (mlp_dim // 2, mlp_dim))              # (64, 128)
    W3 = xavier(ks[6], (mlp_dim // 4, mlp_dim // 2))         # (32, 64)
    Wp = kaiming_sigmoid(ks[7], (2, 2 * factor_num))         # (2, 64)
    b1 = jnp.zeros((mlp_dim,), jnp.float32)                  # module zeroes biases
    b2 = jnp.zeros((mlp_dim // 2,), jnp.float32)
    b3 = jnp.zeros((mlp_dim // 4,), jnp.float32)
    bp = jnp.zeros((2,), jnp.float32)

    def pad2(x, rows, cols):
        return jnp.zeros((rows, cols), x.dtype).at[:x.shape[0], :x.shape[1]].set(x)

    # Layer-1 fold, feature-major: rows 0..127 = W1_half @ E_mlp^T, rows 128..255
    # = E_gmf^T (data in rows 128..159), id columns padded to 128.
    fu = W1[:, :mlp_dim] @ tum.T                             # (128, user_num)
    fi = W1[:, mlp_dim:] @ tim.T                             # (128, item_num)
    tu_fused = jnp.concatenate([pad2(fu, mlp_dim, ID_PAD),
                                pad2(tug.T, mlp_dim, ID_PAD)], axis=0)   # (256, 128)
    ti_fused = jnp.concatenate([pad2(fi, mlp_dim, ID_PAD),
                                pad2(tig.T, mlp_dim, ID_PAD)], axis=0)   # (256, 128)

    # Layer-3 slab: output lands in sublanes [32, 64) of a 128-row slab.
    w3_slab = jnp.zeros((mlp_dim, mlp_dim // 2), jnp.float32).at[
        factor_num:2 * factor_num].set(W3)                   # (128, 64)
    b3_slab = jnp.zeros((mlp_dim, 1), jnp.float32).at[
        factor_num:2 * factor_num, 0].set(b3)                # (128, 1)

    # Packed predict: K-columns 0..31 multiply GMF, 32..63 multiply MLP output;
    # 2 real output rows padded to 128.
    wp_pack = jnp.zeros((LOGIT_PAD, mlp_dim), jnp.float32)
    wp_pack = wp_pack.at[:2, :factor_num].set(Wp[:, :factor_num])
    wp_pack = wp_pack.at[:2, factor_num:2 * factor_num].set(Wp[:, factor_num:])
    bp_slab = jnp.zeros((LOGIT_PAD, 1), jnp.float32).at[:2, 0].set(bp)

    bf = jnp.bfloat16
    return {
        "tu": tu_fused.astype(bf),       # (256, 128) bf16
        "ti": ti_fused.astype(bf),       # (256, 128) bf16
        "b1": b1.reshape(mlp_dim, 1),    # (128, 1) f32
        "w2": W2.astype(bf),             # (64, 128) bf16
        "b2": b2.reshape(-1, 1),         # (64, 1) f32
        "w3": w3_slab.astype(bf),        # (128, 64) bf16
        "b3": b3_slab,                   # (128, 1) f32
        "wp": wp_pack.astype(bf),        # (128, 128) bf16
        "bp": bp_slab,                   # (128, 1) f32
    }


def ncf_reference(user_ids, item_ids, p):
    # Pure-JAX reference mirroring the kernel math (same folded bf16 params,
    # same cast points), batch-major.
    bf = jnp.bfloat16
    dm = p["tu"].shape[0] // 2
    r_u = p["tu"].astype(jnp.float32).T[user_ids]            # (B, 256)
    r_i = p["ti"].astype(jnp.float32).T[item_ids]            # (B, 256)
    h = jnp.maximum(r_u[:, :dm] + r_i[:, :dm] + p["b1"][:, 0], 0.0).astype(bf)
    gmf = r_u[:, dm:] * r_i[:, dm:]                          # (B, 128) f32
    h = jnp.maximum(jnp.dot(h, p["w2"].T, preferred_element_type=jnp.float32)
                    + p["b2"][:, 0], 0.0).astype(bf)         # (B, 64)
    h3 = jnp.maximum(jnp.dot(h, p["w3"].T, preferred_element_type=jnp.float32)
                     + p["b3"][:, 0], 0.0)                   # (B, 128)
    feat = (gmf + h3).astype(bf)
    out = (jnp.dot(feat, p["wp"].T, preferred_element_type=jnp.float32)
           + p["bp"][:, 0])
    return out.astype(bf)[:, :2].astype(jnp.float32)


if __name__ == "__main__":
    key = jax.random.PRNGKey(0)
    kp, ku, ki, kl = jax.random.split(key, 4)

    params = init_params(kp)

    B = 8
    users = jax.random.randint(ku, (B,), 0, 50, dtype=jnp.int32)
    items = jax.random.randint(ki, (B,), 0, 60, dtype=jnp.int32)
    labels = jax.random.randint(kl, (B,), 0, 2, dtype=jnp.int32)

    logits = ncf_forward(users, items, params)               # (B, 2) f32
    jax.block_until_ready(logits)

    # glue: criterion (cross-entropy) + accuracy/result, as the torch forward returns
    logp = jax.nn.log_softmax(logits, axis=-1)
    loss = -jnp.mean(logp[jnp.arange(B), labels])
    preds = jnp.argmax(logits, axis=1)
    accu = jnp.mean((preds == labels).astype(jnp.float32))
    jax.block_until_ready((loss, accu, preds))

    ref = ncf_reference(users, items, params)
    assert logits.shape == (B, 2) and logits.dtype == jnp.float32
    assert bool(jnp.all(jnp.isfinite(logits)))
    np.testing.assert_allclose(np.asarray(logits), np.asarray(ref),
                               rtol=2e-2, atol=1e-4)
    print("KERNEL_OK")
</pallas_src>

<mosaic_0001>
module attributes {stable_mosaic.version = 11 : i64} {
  func.func @ncf_kernel(%arg0: i32, %arg1: memref<1x128xi32, #tpu.memory_space<vmem>>, %arg2: memref<1x128xi32, #tpu.memory_space<vmem>>, %arg3: memref<256x128xbf16, #tpu.memory_space<vmem>>, %arg4: memref<256x128xbf16, #tpu.memory_space<vmem>>, %arg5: memref<128x1xf32, #tpu.memory_space<vmem>>, %arg6: memref<64x128xbf16, #tpu.memory_space<vmem>>, %arg7: memref<64x1xf32, #tpu.memory_space<vmem>>, %arg8: memref<128x64xbf16, #tpu.memory_space<vmem>>, %arg9: memref<128x1xf32, #tpu.memory_space<vmem>>, %arg10: memref<128x128xbf16, #tpu.memory_space<vmem>>, %arg11: memref<128x1xf32, #tpu.memory_space<vmem>>, %arg12: memref<128x128xbf16, #tpu.memory_space<vmem>>) attributes {dimension_semantics = [#tpu.dimension_semantics<parallel>], iteration_bounds = array<i64: 1>, scalar_prefetch = 0 : i64, scratch_operands = 0 : i64, tpu.core_type = #tpu.core_type<tc>, window_params = [{transform_indices = @transform_0, window_bounds = array<i64: 1, 128>}, {transform_indices = @transform_1, window_bounds = array<i64: 1, 128>}, {pipeline_mode = #tpu.pipeline_mode<synchronous>, transform_indices = @transform_2, window_bounds = array<i64: 256, 128>}, {pipeline_mode = #tpu.pipeline_mode<synchronous>, transform_indices = @transform_3, window_bounds = array<i64: 256, 128>}, {pipeline_mode = #tpu.pipeline_mode<synchronous>, transform_indices = @transform_4, window_bounds = array<i64: 128, 1>}, {pipeline_mode = #tpu.pipeline_mode<synchronous>, transform_indices = @transform_5, window_bounds = array<i64: 64, 128>}, {pipeline_mode = #tpu.pipeline_mode<synchronous>, transform_indices = @transform_6, window_bounds = array<i64: 64, 1>}, {pipeline_mode = #tpu.pipeline_mode<synchronous>, transform_indices = @transform_7, window_bounds = array<i64: 128, 64>}, {pipeline_mode = #tpu.pipeline_mode<synchronous>, transform_indices = @transform_8, window_bounds = array<i64: 128, 1>}, {pipeline_mode = #tpu.pipeline_mode<synchronous>, transform_indices = @transform_9, window_bounds = array<i64: 128, 128>}, {pipeline_mode = #tpu.pipeline_mode<synchronous>, transform_indices = @transform_10, window_bounds = array<i64: 128, 1>}, {transform_indices = @transform_11, window_bounds = array<i64: 128, 128>}]} {
    %0 = tpu.iota {dimensions = array<i32: 0>} : vector<128x128xi32>
    %c0 = arith.constant 0 : index
    %c0_0 = arith.constant 0 : index
    %1 = vector.load %arg1[%c0, %c0_0] : memref<1x128xi32, #tpu.memory_space<vmem>>, vector<1x128xi32>
    %2 = vector.broadcast %1 : vector<1x128xi32> to vector<128x128xi32>
    %3 = arith.cmpi eq, %2, %0 : vector<128x128xi32>
    %4 = arith.extui %3 : vector<128x128xi1> to vector<128x128xi32>
    %5 = arith.sitofp %4 : vector<128x128xi32> to vector<128x128xf32>
    %6 = arith.truncf %5 : vector<128x128xf32> to vector<128x128xbf16>
    %c0_1 = arith.constant 0 : index
    %c0_2 = arith.constant 0 : index
    %7 = vector.load %arg2[%c0_1, %c0_2] : memref<1x128xi32, #tpu.memory_space<vmem>>, vector<1x128xi32>
    %8 = vector.broadcast %7 : vector<1x128xi32> to vector<128x128xi32>
    %9 = arith.cmpi eq, %8, %0 : vector<128x128xi32>
    %10 = arith.extui %9 : vector<128x128xi1> to vector<128x128xi32>
    %11 = arith.sitofp %10 : vector<128x128xi32> to vector<128x128xf32>
    %12 = arith.truncf %11 : vector<128x128xf32> to vector<128x128xbf16>
    %c0_3 = arith.constant 0 : index
    %c0_4 = arith.constant 0 : index
    %13 = vector.load %arg3[%c0_3, %c0_4] : memref<256x128xbf16, #tpu.memory_space<vmem>>, vector<256x128xbf16>
    %cst = arith.constant dense<0.000000e+00> : vector<256x128xf32>
    %14 = tpu.matmul %13, %6, %cst {dimension_numbers = #tpu.dot_dimension_numbers<[1], [0], [0], [1], [0, 0, 1, 1], [], []>} : vector<256x128xbf16>, vector<128x128xbf16>, vector<256x128xf32> -> vector<256x128xf32>
    %c0_5 = arith.constant 0 : index
    %c0_6 = arith.constant 0 : index
    %15 = vector.load %arg4[%c0_5, %c0_6] : memref<256x128xbf16, #tpu.memory_space<vmem>>, vector<256x128xbf16>
    %cst_7 = arith.constant dense<0.000000e+00> : vector<256x128xf32>
    %16 = tpu.matmul %15, %12, %cst_7 {dimension_numbers = #tpu.dot_dimension_numbers<[1], [0], [0], [1], [0, 0, 1, 1], [], []>} : vector<256x128xbf16>, vector<128x128xbf16>, vector<256x128xf32> -> vector<256x128xf32>
    %17 = vector.extract_strided_slice %14 {offsets = [0, 0], sizes = [128, 128], strides = [1, 1]} : vector<256x128xf32> to vector<128x128xf32>
    %18 = vector.extract_strided_slice %16 {offsets = [0, 0], sizes = [128, 128], strides = [1, 1]} : vector<256x128xf32> to vector<128x128xf32>
    %19 = arith.addf %17, %18 : vector<128x128xf32>
    %c0_8 = arith.constant 0 : index
    %c0_9 = arith.constant 0 : index
    %20 = vector.load %arg5[%c0_8, %c0_9] : memref<128x1xf32, #tpu.memory_space<vmem>>, vector<128x1xf32>
    %21 = vector.broadcast %20 : vector<128x1xf32> to vector<128x128xf32>
    %22 = arith.addf %19, %21 : vector<128x128xf32>
    %cst_10 = arith.constant 0.000000e+00 : f32
    %23 = vector.broadcast %cst_10 : f32 to vector<128x128xf32>
    %24 = arith.maximumf %22, %23 : vector<128x128xf32>
    %25 = vector.extract_strided_slice %14 {offsets = [128, 0], sizes = [128, 128], strides = [1, 1]} : vector<256x128xf32> to vector<128x128xf32>
    %26 = vector.extract_strided_slice %16 {offsets = [128, 0], sizes = [128, 128], strides = [1, 1]} : vector<256x128xf32> to vector<128x128xf32>
    %27 = arith.mulf %25, %26 : vector<128x128xf32>
    %28 = arith.truncf %24 : vector<128x128xf32> to vector<128x128xbf16>
    %c0_11 = arith.constant 0 : index
    %c0_12 = arith.constant 0 : index
    %29 = vector.load %arg6[%c0_11, %c0_12] : memref<64x128xbf16, #tpu.memory_space<vmem>>, vector<64x128xbf16>
    %cst_13 = arith.constant dense<0.000000e+00> : vector<64x128xf32>
    %30 = tpu.matmul %29, %28, %cst_13 {dimension_numbers = #tpu.dot_dimension_numbers<[1], [0], [0], [1], [0, 0, 1, 1], [], []>} : vector<64x128xbf16>, vector<128x128xbf16>, vector<64x128xf32> -> vector<64x128xf32>
    %c0_14 = arith.constant 0 : index
    %c0_15 = arith.constant 0 : index
    %31 = vector.load %arg7[%c0_14, %c0_15] : memref<64x1xf32, #tpu.memory_space<vmem>>, vector<64x1xf32>
    %32 = vector.broadcast %31 : vector<64x1xf32> to vector<64x128xf32>
    %33 = arith.addf %30, %32 : vector<64x128xf32>
    %cst_16 = arith.constant 0.000000e+00 : f32
    %34 = vector.broadcast %cst_16 : f32 to vector<64x128xf32>
    %35 = arith.maximumf %33, %34 : vector<64x128xf32>
    %36 = arith.truncf %35 : vector<64x128xf32> to vector<64x128xbf16>
    %c0_17 = arith.constant 0 : index
    %c0_18 = arith.constant 0 : index
    %37 = vector.load %arg8[%c0_17, %c0_18] : memref<128x64xbf16, #tpu.memory_space<vmem>>, vector<128x64xbf16>
    %cst_19 = arith.constant dense<0.000000e+00> : vector<128x128xf32>
    %38 = tpu.matmul %37, %36, %cst_19 {dimension_numbers = #tpu.dot_dimension_numbers<[1], [0], [0], [1], [0, 0, 1, 1], [], []>} : vector<128x64xbf16>, vector<64x128xbf16>, vector<128x128xf32> -> vector<128x128xf32>
    %c0_20 = arith.constant 0 : index
    %c0_21 = arith.constant 0 : index
    %39 = vector.load %arg9[%c0_20, %c0_21] : memref<128x1xf32, #tpu.memory_space<vmem>>, vector<128x1xf32>
    %40 = vector.broadcast %39 : vector<128x1xf32> to vector<128x128xf32>
    %41 = arith.addf %38, %40 : vector<128x128xf32>
    %cst_22 = arith.constant 0.000000e+00 : f32
    %42 = vector.broadcast %cst_22 : f32 to vector<128x128xf32>
    %43 = arith.maximumf %41, %42 : vector<128x128xf32>
    %44 = arith.addf %27, %43 : vector<128x128xf32>
    %45 = arith.truncf %44 : vector<128x128xf32> to vector<128x128xbf16>
    %c0_23 = arith.constant 0 : index
    %c0_24 = arith.constant 0 : index
    %46 = vector.load %arg10[%c0_23, %c0_24] : memref<128x128xbf16, #tpu.memory_space<vmem>>, vector<128x128xbf16>
    %cst_25 = arith.constant dense<0.000000e+00> : vector<128x128xf32>
    %47 = tpu.matmul %46, %45, %cst_25 {dimension_numbers = #tpu.dot_dimension_numbers<[1], [0], [0], [1], [0, 0, 1, 1], [], []>} : vector<128x128xbf16>, vector<128x128xbf16>, vector<128x128xf32> -> vector<128x128xf32>
    %c0_26 = arith.constant 0 : index
    %c0_27 = arith.constant 0 : index
    %48 = vector.load %arg11[%c0_26, %c0_27] : memref<128x1xf32, #tpu.memory_space<vmem>>, vector<128x1xf32>
    %49 = vector.broadcast %48 : vector<128x1xf32> to vector<128x128xf32>
    %50 = arith.addf %47, %49 : vector<128x128xf32>
    %51 = arith.truncf %50 : vector<128x128xf32> to vector<128x128xbf16>
    %c0_28 = arith.constant 0 : index
    %c0_29 = arith.constant 0 : index
    %52 = vector.load %arg12[%c0_28, %c0_29] : memref<128x128xbf16, #tpu.memory_space<vmem>>, vector<128x128xbf16>
    tpu.vector_store %arg12[%c0_28, %c0_29], %51 {strides = array<i32>} : memref<128x128xbf16, #tpu.memory_space<vmem>>, vector<128x128xbf16>,
    return
  }
  func.func @transform_0(%arg0: i32) -> (i32, i32) {
    %c0_i32 = arith.constant 0 : i32
    %c0_i32_0 = arith.constant 0 : i32
    return %c0_i32, %arg0 : i32, i32
  }
  func.func @transform_1(%arg0: i32) -> (i32, i32) {
    %c0_i32 = arith.constant 0 : i32
    %c0_i32_0 = arith.constant 0 : i32
    return %c0_i32, %arg0 : i32, i32
  }
  func.func @transform_2(%arg0: i32) -> (i32, i32) {
    %c0_i32 = arith.constant 0 : i32
    %c0_i32_0 = arith.constant 0 : i32
    %c0_i32_1 = arith.constant 0 : i32
    return %c0_i32, %c0_i32_0 : i32, i32
  }
  func.func @transform_3(%arg0: i32) -> (i32, i32) {
    %c0_i32 = arith.constant 0 : i32
    %c0_i32_0 = arith.constant 0 : i32
    %c0_i32_1 = arith.constant 0 : i32
    return %c0_i32, %c0_i32_0 : i32, i32
  }
  func.func @transform_4(%arg0: i32) -> (i32, i32) {
    %c0_i32 = arith.constant 0 : i32
    %c0_i32_0 = arith.constant 0 : i32
    %c0_i32_1 = arith.constant 0 : i32
    return %c0_i32, %c0_i32_0 : i32, i32
  }
  func.func @transform_5(%arg0: i32) -> (i32, i32) {
    %c0_i32 = arith.constant 0 : i32
    %c0_i32_0 = arith.constant 0 : i32
    %c0_i32_1 = arith.constant 0 : i32
    return %c0_i32, %c0_i32_0 : i32, i32
  }
  func.func @transform_6(%arg0: i32) -> (i32, i32) {
    %c0_i32 = arith.constant 0 : i32
    %c0_i32_0 = arith.constant 0 : i32
    %c0_i32_1 = arith.constant 0 : i32
    return %c0_i32, %c0_i32_0 : i32, i32
  }
  func.func @transform_7(%arg0: i32) -> (i32, i32) {
    %c0_i32 = arith.constant 0 : i32
    %c0_i32_0 = arith.constant 0 : i32
    %c0_i32_1 = arith.constant 0 : i32
    return %c0_i32, %c0_i32_0 : i32, i32
  }
  func.func @transform_8(%arg0: i32) -> (i32, i32) {
    %c0_i32 = arith.constant 0 : i32
    %c0_i32_0 = arith.constant 0 : i32
    %c0_i32_1 = arith.constant 0 : i32
    return %c0_i32, %c0_i32_0 : i32, i32
  }
  func.func @transform_9(%arg0: i32) -> (i32, i32) {
    %c0_i32 = arith.constant 0 : i32
    %c0_i32_0 = arith.constant 0 : i32
    %c0_i32_1 = arith.constant 0 : i32
    return %c0_i32, %c0_i32_0 : i32, i32
  }
  func.func @transform_10(%arg0: i32) -> (i32, i32) {
    %c0_i32 = arith.constant 0 : i32
    %c0_i32_0 = arith.constant 0 : i32
    %c0_i32_1 = arith.constant 0 : i32
    return %c0_i32, %c0_i32_0 : i32, i32
  }
  func.func @transform_11(%arg0: i32) -> (i32, i32) {
    %c0_i32 = arith.constant 0 : i32
    %c0_i32_0 = arith.constant 0 : i32
    return %c0_i32, %arg0 : i32, i32
  }
}

</mosaic_0001>

<bundles_post_ra>
// kernel: ncf_forward.1
= control target key start
LH: loop header
LB: loop body
LE: loop exit
PB: predicated region body
PF: predicated region fallthrough
CT: control target
= control target key end

     0   :  { %v39_v0 = vlaneseq  ;;  %v2309_v2 = vmov 0   ;;  %v2310_v14 = vmov 1.0|1.0   ;;  %s3088_s0 = inlined_call_operand.vmem [shape: s32[1,128], index: 0, kind: input, shape index: {}]   ;;  %s3089_s2 = inlined_call_operand.vmem [shape: bf16[256,128], index: 2, kind: input, shape index: {}]   ;;  %s3090_s4 = inlined_call_operand.vmem [shape: f32[128,1], index: 4, kind: input, shape index: {}]   ;;  %s3091_s3 = inlined_call_operand.vmem [shape: bf16[256,128], index: 3, kind: input, shape index: {}]   ;;  %s3092_s1 = inlined_call_operand.vmem [shape: s32[1,128], index: 1, kind: input, shape index: {}]   ;;  %s3093_s6 = inlined_call_operand.vmem [shape: f32[64,1], index: 6, kind: input, shape index: {}]   ;;  %s3094_s8 = inlined_call_operand.vmem [shape: f32[128,1], index: 8, kind: input, shape index: {}]   ;;  %s3095_s10 = inlined_call_operand.vmem [shape: f32[128,1], index: 10, kind: input, shape index: {}]   ;;  %s3096_s5 = inlined_call_operand.vmem [shape: bf16[64,128], index: 5, kind: input, shape index: {}]   ;;  %s3097_s7 = inlined_call_operand.vmem [shape: bf16[128,64], index: 7, kind: input, shape index: {}]   ;;  %s3098_s9 = inlined_call_operand.vmem [shape: bf16[128,128], index: 9, kind: input, shape index: {}]   ;;  %s3099_s11 = inlined_call_operand.vmem [shape: bf16[128,128], index: 11, kind: output, shape index: {}]  }
   0x1   :  { %v2374_v1 = vld [vmem:[%s3088_s0] ss:$0 sm:$0xff]  ;;  %2255 = vset.pattern.permute.xlu0 %v2309_v2  ;;  %2256 = vset.pattern.permute.xlu1 %v2309_v2  ;;  %v774_v12 = vld [vmem:[%s3090_s4 + $0x10] sm:$0xff]  ;;  %v773_v13 = vld [vmem:[%s3090_s4 + $0x8] sm:$0xff] }
   0x2   :  { %v2376_v3 = vshrl.u32 %v39_v0, 7  ;;  %v2257_v4 = vld [vmem:[%s3089_s2] sm:$0xff]   ;;  %800 = vperm.xlu1 %2256, %v774_v12   ;;  %v775_v18 = vld [vmem:[%s3090_s4 + $0x18] sm:$0xff]  ;;  %v777_v23 = vld [vmem:[%s3090_s4 + $0x28] sm:$0xff] }
   0x3   :  { %v772_v5 = vld [vmem:[%s3090_s4] sm:$0xff]  ;;  %2045 = vmatprep.mubr.bf16.mxu0 %v2257_v4  ;;  %v778_v24 = vld [vmem:[%s3090_s4 + $0x30] sm:$0xff]  ;;  %v779_v28 = vld [vmem:[%s3090_s4 + $0x38] sm:$0xff] }
   0x4   :  { %v2385_v6 = vadd.s32 8, %v2376_v3  ;;  %vm61_vm0 = vcmp.eq.s32.totalorder %v2374_v1, %v2376_v3  ;;  %v2390_v7 = vadd.s32 16, %v2376_v3  ;;  %v2393_v8 = vadd.s32 24, %v2376_v3  ;;  %790 = vperm.xlu0 %2255, %v772_v5   ;;  %v776_v19 = vld [vmem:[%s3090_s4 + $0x20] sm:$0xff]  ;;  %v781_v33 = vld [vmem:[%s3090_s4 + $0x48] sm:$0xff]  ;;  %v782_v34 = vld [vmem:[%s3090_s4 + $0x50] sm:$0xff] }
   0x5   :  { %v2396_v9 = vadd.s32 32, %v2376_v3  ;;  %v2399_v10 = vadd.s32 40, %v2376_v3  ;;  %v2429_v16 = vadd.s32 48, %v2376_v3  ;;  %v2432_v17 = vadd.s32 56, %v2376_v3  ;;  %v780_v29 = vld [vmem:[%s3090_s4 + $0x40] sm:$0xff]  ;;  %v783_v38 = vld [vmem:[%s3090_s4 + $0x58] sm:$0xff] }
   0x6   :  { %vm62_vm1 = vcmp.eq.s32.totalorder %v2374_v1, %v2385_v6  ;;  %vm63_vm2 = vcmp.eq.s32.totalorder %v2374_v1, %v2390_v7  ;;  %vm64_vm3 = vcmp.eq.s32.totalorder %v2374_v1, %v2393_v8  ;;  %v2458_v21 = vadd.s32 64, %v2376_v3  ;;  %805 = vperm.xlu1 %2256, %v775_v18   ;;  %v784_v39 = vld [vmem:[%s3090_s4 + $0x60] sm:$0xff]  ;;  %v785_v42 = vld [vmem:[%s3090_s4 + $0x68] sm:$0xff]  ;;  %v786_v43 = vld [vmem:[%s3090_s4 + $0x70] sm:$0xff] }
   0x7   :  { %vm2407_vm4 = vmpackc.low %vm62_vm1, %vm61_vm0  ;;  %vm65_vm6 = vcmp.eq.s32.totalorder %v2374_v1, %v2396_v9  ;;  %vm66_vm7 = vcmp.eq.s32.totalorder %v2374_v1, %v2399_v10  ;;  %vm67_vm9 = vcmp.eq.s32.totalorder %v2374_v1, %v2429_v16  ;;  %vm68_vm10 = vcmp.eq.s32.totalorder %v2374_v1, %v2432_v17  ;;  %v2591_v41 = vld [vmem:[%s3092_s1] ss:$0 sm:$0xff]  ;;  %v787_v45 = vld [vmem:[%s3090_s4 + $0x78] sm:$0xff] }
   0x8   :  { %2029 = vmatprep.subr.msk.bf16.mxu0 %vm2407_vm4, %v2310_v14  ;;  %vm2420_vm5 = vmpackc.low %vm64_vm3, %vm63_vm2  ;;  %795 = vperm.xlu0 %2255, %v773_v13   ;;  %v2461_v22 = vadd.s32 72, %v2376_v3  ;;  %vm69_vm12 = vcmp.eq.s32.totalorder %v2374_v1, %v2458_v21  ;;  %v2487_v26 = vadd.s32 80, %v2376_v3  ;;  %v2490_v27 = vadd.s32 88, %v2376_v3  ;;  %v932_v46 = vld [vmem:[%s3093_s6] sm:$0xff]  ;;  %v2258_v48 = vld [vmem:[%s3089_s2 + $0x8] sm:$0xff]  }
   0x9   :  { %2030 = vmatpush3.bf16.msk.msra.mxu0 %vm2407_vm4, %v2310_v14  ;;  %vm2446_vm8 = vmpackc.low %vm66_vm7, %vm65_vm6  ;;  %2205 = vmatprep.subr.msk.bf16.mxu1 %vm2407_vm4, %v2310_v14  ;;  %v2519_v31 = vadd.s32 96, %v2376_v3  ;;  %v2522_v32 = vadd.s32 104, %v2376_v3  ;;  %v2551_v36 = vadd.s32 112, %v2376_v3  ;;  %v2554_v37 = vadd.s32 120, %v2376_v3  ;;  %v2259_v49 = vld [vmem:[%s3089_s2 + $0x10] sm:$0xff]   ;;  %v933_v50 = vld [vmem:[%s3093_s6 + $0x8] sm:$0xff] }
   0xa   :  { %2031 = vmatprep.subr.msk.bf16.mxu0 %vm2420_vm5, %v2310_v14  ;;  %vm2475_vm11 = vmpackc.low %vm68_vm10, %vm67_vm9  ;;  %2213 = vmatpush3.bf16.msk.msra.mxu1 %vm2407_vm4, %v2310_v14  ;;  %vm70_vm13 = vcmp.eq.s32.totalorder %v2374_v1, %v2461_v22  ;;  %vm71_vm15 = vcmp.eq.s32.totalorder %v2374_v1, %v2487_v26  ;;  %vm72_vm0 = vcmp.eq.s32.totalorder %v2374_v1, %v2490_v27  ;;  %v934_v52 = vld [vmem:[%s3093_s6 + $0x10] sm:$0xff]  ;;  %v935_v54 = vld [vmem:[%s3093_s6 + $0x18] sm:$0xff] }
   0xb   :  { %815 = vperm.xlu1 %2256, %v777_v23   ;;  %2206 = vmatprep.subr.msk.bf16.mxu1 %vm2420_vm5, %v2310_v14  ;;  %vm2507_vm14 = vmpackc.low %vm70_vm13, %vm69_vm12  ;;  %vm73_vm2 = vcmp.eq.s32.totalorder %v2374_v1, %v2519_v31  ;;  %vm74_vm3 = vcmp.eq.s32.totalorder %v2374_v1, %v2522_v32  ;;  %vm76_vm6 = vcmp.eq.s32.totalorder %v2374_v1, %v2554_v37  ;;  %v2260_v55 = vld [vmem:[%s3089_s2 + $0x18] sm:$0xff]   ;;  %v936_v57 = vld [vmem:[%s3093_s6 + $0x20] sm:$0xff] }
   0xc   :  { %810 = vperm.xlu0 %2255, %v776_v19   ;;  %vm2539_vm1 = vmpackc.low %vm72_vm0, %vm71_vm15  ;;  %vm123_vm9 = vcmp.eq.s32.totalorder %v2591_v41, %v2385_v6  ;;  %vm125_vm12 = vcmp.eq.s32.totalorder %v2591_v41, %v2393_v8  ;;  %vm126_vm13 = vcmp.eq.s32.totalorder %v2591_v41, %v2396_v9  ;;  %vm128_vm0 = vcmp.eq.s32.totalorder %v2591_v41, %v2429_v16  ;;  %v2261_v58 = vld [vmem:[%s3089_s2 + $0x20] sm:$0xff]   ;;  %v937_v60 = vld [vmem:[%s3093_s6 + $0x28] sm:$0xff] }
   0xd   :  { %2032 = vmatpush3.bf16.msk.msra.mxu0 %vm2420_vm5, %v2310_v14  ;;  %vm2571_vm4 = vmpackc.low %vm74_vm3, %vm73_vm2  ;;  %vm130_vm2 = vcmp.eq.s32.totalorder %v2591_v41, %v2458_v21  ;;  %vm131_vm3 = vcmp.eq.s32.totalorder %v2591_v41, %v2461_v22  ;;  %v938_v61 = vld [vmem:[%s3093_s6 + $0x30] sm:$0xff]  ;;  %v939_v62 = vld [vmem:[%s3093_s6 + $0x38] sm:$0xff] }
   0xe   :  { %2033 = vmatprep.subr.msk.bf16.mxu0 %vm2446_vm8, %v2310_v14  ;;  %2214 = vmatpush3.bf16.msk.msra.mxu1 %vm2420_vm5, %v2310_v14  ;;  %vm75_vm5 = vcmp.eq.s32.totalorder %v2374_v1, %v2551_v36  ;;  %v1097_v63 = vld [vmem:[%s3094_s8] sm:$0xff]  ;;  %v2262_v0 = vld [vmem:[%s3089_s2 + $0x28] sm:$0xff]   ;;  %v2263_v1 = vld [vmem:[%s3089_s2 + $0x30] sm:$0xff]  }
   0xf   :  { %825 = vperm.xlu1 %2256, %v779_v28   ;;  %2207 = vmatprep.subr.msk.bf16.mxu1 %vm2446_vm8, %v2310_v14  ;;  %vm2602_vm7 = vmpackc.low %vm76_vm6, %vm75_vm5  ;;  %v1098_v2 = vld [vmem:[%s3094_s8 + $0x8] sm:$0xff]  ;;  %v1099_v4 = vld [vmem:[%s3094_s8 + $0x10] sm:$0xff] }
  0x10   :  { %820 = vperm.xlu0 %2255, %v778_v24   ;;  %vm2705_vm6 = vmpackc.low %vm131_vm3, %vm130_vm2  ;;  %v1100_v5 = vld [vmem:[%s3094_s8 + $0x18] sm:$0xff]  ;;  %v1101_v6 = vld [vmem:[%s3094_s8 + $0x20] sm:$0xff] }
  0x11   :  { %2034 = vmatpush3.bf16.msk.msra.mxu0 %vm2446_vm8, %v2310_v14  ;;  %v2265_v8 = vld [vmem:[%s3091_s3] sm:$0xff]   ;;  %v1102_v9 = vld [vmem:[%s3094_s8 + $0x28] sm:$0xff]  ;;  %v1104_v11 = vld [vmem:[%s3094_s8 + $0x38] sm:$0xff] }
  0x12   :  { %2035 = vmatprep.subr.msk.bf16.mxu0 %vm2475_vm11, %v2310_v14  ;;  %2215 = vmatpush3.bf16.msk.msra.mxu1 %vm2446_vm8, %v2310_v14  ;;  %vm122_vm8 = vcmp.eq.s32.totalorder %v2591_v41, %v2376_v3  ;;  %v1105_v12 = vld [vmem:[%s3094_s8 + $0x40] sm:$0xff]  ;;  %v2266_v13 = vld [vmem:[%s3091_s3 + $0x8] sm:$0xff]   ;;  %v2267_v15 = vld [vmem:[%s3091_s3 + $0x10] sm:$0xff]  }
  0x13   :  { %835 = vperm.xlu1 %2256, %v781_v33   ;;  %2208 = vmatprep.subr.msk.bf16.mxu1 %vm2475_vm11, %v2310_v14  ;;  %vm2628_vm10 = vmpackc.low %vm123_vm9, %vm122_vm8  ;;  %vm133_vm8 = vcmp.eq.s32.totalorder %v2591_v41, %v2490_v27  ;;  %v1106_v16 = vld [vmem:[%s3094_s8 + $0x48] sm:$0xff]  ;;  %v1109_v18 = vld [vmem:[%s3094_s8 + $0x60] sm:$0xff] }
  0x14   :  { %830 = vperm.xlu0 %2255, %v780_v29   ;;  %v2268_v19 = vld [vmem:[%s3091_s3 + $0x18] sm:$0xff]   ;;  %v2269_v20 = vld [vmem:[%s3091_s3 + $0x20] sm:$0xff]   ;;  %v1110_v21 = vld [vmem:[%s3094_s8 + $0x68] sm:$0xff] }
  0x15   :  { %2036 = vmatpush3.bf16.msk.msra.mxu0 %vm2475_vm11, %v2310_v14  ;;  %v1111_v22 = vld [vmem:[%s3094_s8 + $0x70] sm:$0xff]  ;;  %v1112_v23 = vld [vmem:[%s3094_s8 + $0x78] sm:$0xff]  ;;  %v1411_v24 = vld [vmem:[%s3095_s10] sm:$0xff] }
  0x16   :  { %2037 = vmatprep.subr.msk.bf16.mxu0 %vm2507_vm14, %v2310_v14  ;;  %2216 = vmatpush3.bf16.msk.msra.mxu1 %vm2475_vm11, %v2310_v14  ;;  %vm124_vm11 = vcmp.eq.s32.totalorder %v2591_v41, %v2390_v7  ;;  %v2264_v7 = vld [vmem:[%s3089_s2 + $0x38] sm:$0xff]   ;;  %v2270_v25 = vld [vmem:[%s3091_s3 + $0x28] sm:$0xff]   ;;  %v1413_v28 = vld [vmem:[%s3095_s10 + $0x10] sm:$0xff] }
  0x17   :  { %845 = vperm.xlu1 %2256, %v783_v38   ;;  %2209 = vmatprep.subr.msk.bf16.mxu1 %vm2507_vm14, %v2310_v14  ;;  %vm2661_vm15 = vmpackc.low %vm125_vm12, %vm124_vm11  ;;  %vm135_vm11 = vcmp.eq.s32.totalorder %v2591_v41, %v2522_v32  ;;  %v1412_v27 = vld [vmem:[%s3095_s10 + $0x8] sm:$0xff]  ;;  %v1414_v29 = vld [vmem:[%s3095_s10 + $0x18] sm:$0xff] }
  0x18   :  { %840 = vperm.xlu0 %2255, %v782_v34   ;;  %v1415_v30 = vld [vmem:[%s3095_s10 + $0x20] sm:$0xff]  ;;  %v1416_v32 = vld [vmem:[%s3095_s10 + $0x28] sm:$0xff]  ;;  %v1417_v33 = vld [vmem:[%s3095_s10 + $0x30] sm:$0xff] }
  0x19   :  { %2038 = vmatpush3.bf16.msk.msra.mxu0 %vm2507_vm14, %v2310_v14  ;;  %v1418_v34 = vld [vmem:[%s3095_s10 + $0x38] sm:$0xff]  ;;  %v1419_v35 = vld [vmem:[%s3095_s10 + $0x40] sm:$0xff]  ;;  %v1424_v40 = vld [vmem:[%s3095_s10 + $0x68] sm:$0xff] }
  0x1a   :  { %2039 = vmatprep.subr.msk.bf16.mxu0 %vm2539_vm1, %v2310_v14  ;;  %2217 = vmatpush3.bf16.msk.msra.mxu1 %vm2507_vm14, %v2310_v14  ;;  %vm127_vm14 = vcmp.eq.s32.totalorder %v2591_v41, %v2399_v10  ;;  %v1103_v10 = vld [vmem:[%s3094_s8 + $0x30] sm:$0xff]  ;;  %v1422_v38 = vld [vmem:[%s3095_s10 + $0x58] sm:$0xff]  ;;  %v2274_v44 = vld [vmem:[%s3091_s3 + $0x40] sm:$0xff]  }
  0x1b   :  { %855 = vperm.xlu1 %2256, %v785_v42   ;;  %2210 = vmatprep.subr.msk.bf16.mxu1 %vm2539_vm1, %v2310_v14  ;;  %vm2682_vm5 = vmpackc.low %vm127_vm14, %vm126_vm13  ;;  %vm136_vm13 = vcmp.eq.s32.totalorder %v2591_v41, %v2551_v36  ;;  %vm137_vm14 = vcmp.eq.s32.totalorder %v2591_v41, %v2554_v37  ;;  %v1420_v36 = vld [vmem:[%s3095_s10 + $0x48] sm:$0xff]  ;;  %v1421_v37 = vld [vmem:[%s3095_s10 + $0x50] sm:$0xff] }
  0x1c   :  { %850 = vperm.xlu0 %2255, %v784_v39   ;;  %v1423_v39 = vld [vmem:[%s3095_s10 + $0x60] sm:$0xff]  ;;  %v1426_v42 = vld [vmem:[%s3095_s10 + $0x78] sm:$0xff]  ;;  %v2277_v47 = vld [vmem:[%s3089_s2 + $0x50] sm:$0xff]  }
  0x1d   :  { %2040 = vmatpush3.bf16.msk.msra.mxu0 %vm2539_vm1, %v2310_v14  ;;  %v2281_v51 = vld [vmem:[%s3089_s2 + $0x60] sm:$0xff]   ;;  %v2283_v53 = vld [vmem:[%s3089_s2 + $0x68] sm:$0xff]   ;;  %v2286_v56 = vld [vmem:[%s3091_s3 + $0x70] sm:$0xff]  }
  0x1e   :  { %2041 = vmatprep.subr.msk.bf16.mxu0 %vm2571_vm4, %v2310_v14  ;;  %2218 = vmatpush3.bf16.msk.msra.mxu1 %vm2539_vm1, %v2310_v14  ;;  %vm129_vm1 = vcmp.eq.s32.totalorder %v2591_v41, %v2432_v17  ;;  %v1107_v17 = vld [vmem:[%s3094_s8 + $0x50] sm:$0xff]  ;;  %v2289_v59 = vld [vmem:[%s3096_s5] sm:$0xff]  }
  0x1f   :  { %865 = vperm.xlu1 %2256, %v787_v45   ;;  %2211 = vmatprep.subr.msk.bf16.mxu1 %vm2571_vm4, %v2310_v14  ;;  %v2275_v45 = vld [vmem:[%s3089_s2 + $0x48] sm:$0xff]  }
  0x20   :  { %860 = vperm.xlu0 %2255, %v786_v43   ;;  %v2273_v43 = vld [vmem:[%s3089_s2 + $0x40] sm:$0xff]  }
  0x21   :  { %2042 = vmatpush3.bf16.msk.msra.mxu0 %vm2571_vm4, %v2310_v14  ;;  %2061 = vmatprep.mubr.bf16.mxu1 %v2273_v43 }
  0x22   :  { %2043 = vmatprep.subr.msk.bf16.mxu0 %vm2602_vm7, %v2310_v14  ;;  %2219 = vmatpush3.bf16.msk.msra.mxu1 %vm2571_vm4, %v2310_v14  ;;  %vm2695_vm4 = vmpackc.low %vm129_vm1, %vm128_vm0  ;;  %vm1233_vm0 = vcmask 523264  }
  0x23   :  { %947 = vperm.xlu1 %2256, %v933_v50   ;;  %2212 = vmatprep.subr.msk.bf16.mxu1 %vm2602_vm7, %v2310_v14  ;;  %v2280_v50 = vld [vmem:[%s3091_s3 + $0x58] sm:$0xff]  }
  0x24   :  { %942 = vperm.xlu0 %2255, %v932_v46   ;;  %v2276_v46 = vld [vmem:[%s3091_s3 + $0x48] sm:$0xff]  }
  0x25   :  { %2044 = vmatpush3.bf16.msk.msra.mxu0 %vm2602_vm7, %v2310_v14 }
  0x26   :  { %2077 = vmatprep.subr.msk.bf16.mxu0 %vm2628_vm10, %v2310_v14  ;;  %2220 = vmatpush3.bf16.msk.msra.mxu1 %vm2602_vm7, %v2310_v14  ;;  %vm132_vm7 = vcmp.eq.s32.totalorder %v2591_v41, %v2487_v26  ;;  %v2271_v26 = vld [vmem:[%s3091_s3 + $0x30] sm:$0xff]  }
  0x27   :  { %957 = vperm.xlu1 %2256, %v935_v54   ;;  %vm2758_vm9 = vmpackc.low %vm133_vm8, %vm132_vm7  ;;  %v2284_v54 = vld [vmem:[%s3091_s3 + $0x68] sm:$0xff]  }
  0x28   :  { %2046 = vmatmul.mubr.bf16.vlgmr.msra.gmra.mrb[0].mxu0 %v2258_v48  ;;  %952 = vperm.xlu0 %2255, %v934_v52   ;;  %v2278_v48 = vld [vmem:[%s3091_s3 + $0x50] sm:$0xff]   ;;  %v2282_v52 = vld [vmem:[%s3091_s3 + $0x60] sm:$0xff]  }
  0x29   :  { %2078 = vmatpush3.bf16.msk.msra.mxu0 %vm2628_vm10, %v2310_v14  ;;  %2049 = vmatprep.mubr.bf16.mxu0 %v2259_v49  ;;  %vm134_vm10 = vcmp.eq.s32.totalorder %v2591_v41, %v2519_v31  ;;  %v2272_v31 = vld [vmem:[%s3091_s3 + $0x38] sm:$0xff]   ;;  %v1425_v41 = vld [vmem:[%s3095_s10 + $0x70] sm:$0xff] }
  0x2a   :  { %2079 = vmatprep.subr.msk.bf16.mxu0 %vm2661_vm15, %v2310_v14  ;;  %vm1830_vm12 = vmpackc.low %vm135_vm11, %vm134_vm10  ;;  %2062 = vmatmul.mubr.bf16.vlgmr.msra.gmra.mrb[0].mxu1 %v2275_v45  ;;  %v2279_v49 = vld [vmem:[%s3089_s2 + $0x58] sm:$0xff]  }
  0x2b   :  { %967 = vperm.xlu1 %2256, %v937_v60   ;;  %2065 = vmatprep.mubr.bf16.mxu1 %v2277_v47 }
  0x2c   :  { %962 = vperm.xlu0 %2255, %v936_v57   ;;  %v2287_v57 = vld [vmem:[%s3089_s2 + $0x78] sm:$0xff]  }
  0x2d   :  { %2080 = vmatpush3.bf16.msk.msra.mxu0 %vm2661_vm15, %v2310_v14  ;;  %vm1832_vm15 = vmpackc.low %vm137_vm14, %vm136_vm13 }
  0x2e   :  { %2081 = vmatprep.subr.msk.bf16.mxu0 %vm2682_vm5, %v2310_v14 }
  0x2f   :  { %977 = vperm.xlu1 %2256, %v939_v62  }
  0x30   :  { %2050 = vmatmul.mubr.bf16.gmra.mrb[4].mxu0 %v2260_v55  ;;  %972 = vperm.xlu0 %2255, %v938_v61   ;;  %v2285_v55 = vld [vmem:[%s3089_s2 + $0x70] sm:$0xff]  }
  0x31   :  { %2082 = vmatpush3.bf16.msk.msra.mxu0 %vm2682_vm5, %v2310_v14  ;;  %2053 = vmatprep.mubr.bf16.mxu0 %v2261_v58  ;;  %v2288_v58 = vld [vmem:[%s3091_s3 + $0x78] sm:$0xff]  }
  0x32   :  { %2083 = vmatprep.subr.msk.bf16.mxu0 %vm2695_vm4, %v2310_v14  ;;  %2066 = vmatmul.mubr.bf16.gmra.mrb[4].mxu1 %v2279_v49 }
  0x33   :  { %1120 = vperm.xlu1 %2256, %v1098_v2   ;;  %2069 = vmatprep.mubr.bf16.mxu1 %v2281_v51 }
  0x34   :  { %1115 = vperm.xlu0 %2255, %v1097_v63  }
  0x35   :  { %2084 = vmatpush3.bf16.msk.msra.mxu0 %vm2695_vm4, %v2310_v14 }
  0x36   :  { %2085 = vmatprep.subr.msk.bf16.mxu0 %vm2705_vm6, %v2310_v14 }
  0x37   :  { %1130 = vperm.xlu1 %2256, %v1100_v5  }
  0x38   :  { %2054 = vmatmul.mubr.bf16.gmra.mrb[8].mxu0 %v2262_v0  ;;  %1125 = vperm.xlu0 %2255, %v1099_v4  }
  0x39   :  { %2086 = vmatpush3.bf16.msk.msra.mxu0 %vm2705_vm6, %v2310_v14  ;;  %2057 = vmatprep.mubr.bf16.mxu0 %v2263_v1 }
  0x3a   :  { %2087 = vmatprep.subr.msk.bf16.mxu0 %vm2758_vm9, %v2310_v14  ;;  %2070 = vmatmul.mubr.bf16.gmra.mrb[8].mxu1 %v2283_v53 }
  0x3b   :  { %1140 = vperm.xlu1 %2256, %v1102_v9   ;;  %2073 = vmatprep.mubr.bf16.mxu1 %v2285_v55 }
  0x3c   :  { %1135 = vperm.xlu0 %2255, %v1101_v6  }
  0x3d   :  { %2088 = vmatpush3.bf16.msk.msra.mxu0 %vm2758_vm9, %v2310_v14 }
  0x3e   :  { %2089 = vmatprep.subr.msk.bf16.mxu0 %vm1830_vm12, %v2310_v14 }
  0x3f   :  { %1150 = vperm.xlu1 %2256, %v1104_v11  }
  0x40   :  { %2058 = vmatmul.mubr.bf16.gmra.mrb[12].mxu0 %v2264_v7  ;;  %1145 = vperm.xlu0 %2255, %v1103_v10  }
  0x41   :  { %2090 = vmatpush3.bf16.msk.msra.mxu0 %vm1830_vm12, %v2310_v14  ;;  %2093 = vmatprep.mubr.bf16.mxu0 %v2265_v8 }
  0x42   :  { %2091 = vmatprep.subr.msk.bf16.mxu0 %vm1832_vm15, %v2310_v14  ;;  %2074 = vmatmul.mubr.bf16.gmra.mrb[12].mxu1 %v2287_v57 }
  0x43   :  { %1160 = vperm.xlu1 %2256, %v1106_v16   ;;  %2141 = vmatprep.mubr.bf16.mxu1 %v2289_v59 }
  0x44   :  { %1155 = vperm.xlu0 %2255, %v1105_v12  }
  0x45   :  { %2092 = vmatpush3.bf16.msk.msra.mxu0 %vm1832_vm15, %v2310_v14  ;;  %v1108_v14 = vld [vmem:[%s3094_s8 + $0x58] sm:$0xff] }
  0x47   :  { %1170 = vperm.xlu1 %2256, %v1108_v14  }
  0x48   :  { %2094 = vmatmul.mubr.bf16.vlgmr.msra.gmra.mrb[0].mxu0 %v2266_v13  ;;  %1165 = vperm.xlu0 %2255, %v1107_v17  }
  0x49   :  { %2097 = vmatprep.mubr.bf16.mxu0 %v2267_v15 }
  0x4b   :  { %1180 = vperm.xlu1 %2256, %v1110_v21  }
  0x4c   :  { %1175 = vperm.xlu0 %2255, %v1109_v18  }
  0x4f   :  { %1190 = vperm.xlu1 %2256, %v1112_v23  }
  0x50   :  { %2098 = vmatmul.mubr.bf16.gmra.mrb[4].mxu0 %v2268_v19  ;;  %1185 = vperm.xlu0 %2255, %v1111_v22  }
  0x51   :  { %2101 = vmatprep.mubr.bf16.mxu0 %v2269_v20 }
  0x53   :  { %1434 = vperm.xlu1 %2256, %v1412_v27  }
  0x54   :  { %1429 = vperm.xlu0 %2255, %v1411_v24  }
  0x57   :  { %1444 = vperm.xlu1 %2256, %v1414_v29  }
  0x58   :  { %2102 = vmatmul.mubr.bf16.gmra.mrb[8].mxu0 %v2270_v25  ;;  %1439 = vperm.xlu0 %2255, %v1413_v28  }
  0x59   :  { %2105 = vmatprep.mubr.bf16.mxu0 %v2271_v26 }
  0x5b   :  { %1454 = vperm.xlu1 %2256, %v1416_v32  }
  0x5c   :  { %1449 = vperm.xlu0 %2255, %v1415_v30  }
  0x5f   :  { %1464 = vperm.xlu1 %2256, %v1418_v34  }
  0x60   :  { %2106 = vmatmul.mubr.bf16.gmra.mrb[12].mxu0 %v2272_v31  ;;  %1459 = vperm.xlu0 %2255, %v1417_v33  }
  0x61   :  { %2109 = vmatprep.mubr.bf16.mxu0 %v2274_v44 }
  0x63   :  { %1474 = vperm.xlu1 %2256, %v1420_v36  }
  0x64   :  { %1469 = vperm.xlu0 %2255, %v1419_v35  }
  0x67   :  { %1484 = vperm.xlu1 %2256, %v1422_v38  }
  0x68   :  { %1479 = vperm.xlu0 %2255, %v1421_v37   ;;  %2110 = vmatmul.mubr.bf16.gmra.mrb[16].mxu0 %v2276_v46 }
  0x69   :  { %2113 = vmatprep.mubr.bf16.mxu0 %v2278_v48 }
  0x6b   :  { %1494 = vperm.xlu1 %2256, %v1424_v40  }
  0x6c   :  { %1489 = vperm.xlu0 %2255, %v1423_v39  }
  0x6f   :  { %1504 = vperm.xlu1 %2256, %v1426_v42  }
  0x70   :  { %1499 = vperm.xlu0 %2255, %v1425_v41   ;;  %2114 = vmatmul.mubr.bf16.gmra.mrb[20].mxu0 %v2280_v50 }
  0x71   :  { %2117 = vmatprep.mubr.bf16.mxu0 %v2282_v52 }
  0x78   :  { %2118 = vmatmul.mubr.bf16.gmra.mrb[24].mxu0 %v2284_v54 }
  0x79   :  { %2121 = vmatprep.mubr.bf16.mxu0 %v2286_v56 }
  0x80   :  { %2122 = vmatmul.mubr.bf16.gmra.mrb[28].mxu0 %v2288_v58 }
  0x81   :  { %v801_v61 = vpop.permute.xlu1 %800 }
  0x83   :  { %v791_v60 = vpop.permute.xlu0 %790 }
  0x85   :  { %v806_v63 = vpop.permute.xlu1 %805 }
  0x87   :  { %v796_v62 = vpop.permute.xlu0 %795 }
  0x8a   :  { %v816_v1 = vpop.permute.xlu1 %815 }
  0x8b   :  { %v811_v0 = vpop.permute.xlu0 %810 }
  0x8e   :  { %v826_v6 = vpop.permute.xlu1 %825 }
  0x8f   :  { %v821_v2 = vpop.permute.xlu0 %820 }
  0x92   :  { %v836_v18 = vpop.permute.xlu1 %835 }
  0x93   :  { %v831_v15 = vpop.permute.xlu0 %830 }
  0x96   :  { %v846_v31 = vpop.permute.xlu1 %845 }
  0x97   :  { %v841_v27 = vpop.permute.xlu0 %840 }
  0x9a   :  { %v856_v44 = vpop.permute.xlu1 %855 }
  0x9b   :  { %v851_v39 = vpop.permute.xlu0 %850 }
  0x9e   :  { %v866_v56 = vpop.permute.xlu1 %865 }
  0x9f   :  { %v861_v51 = vpop.permute.xlu0 %860 }
 0x11b   :  { %v2095_v3 = vpop.f32.mrb[0].mxu0 }
 0x11c   :  { %v870_v4 = vadd.f32 %v2095_v3, %v801_v61  ;;  %v629_v5 = vpop.f32.mrb[1].mxu0 }
 0x11d   :  { %v868_v7 = vadd.f32 %v791_v60, %v629_v5  ;;  %v2096_v8 = vpop.f32.mrb[2].mxu0  ;;  %v2291_v5 = vld [vmem:[%s3096_s5 + $0x10] sm:$0xff]  }
 0x11e   :  { %v871_v9 = vadd.f32 %v2096_v8, %v806_v63  ;;  %v632_v10 = vpop.f32.mrb[3].mxu0  ;;  %v886_v12 = vmax.f32 %v870_v4, 0.0  ;;  %v2290_v4 = vld [vmem:[%s3096_s5 + $0x8] sm:$0xff]  }
 0x11f   :  { %v869_v11 = vadd.f32 %v796_v62, %v632_v10  ;;  %v884_v16 = vmax.f32 %v868_v7, 0.0  ;;  %v2063_v7 = vpop.f32.mrb[0].mxu1 }
 0x120   :  { %v887_v13 = vmax.f32 %v871_v9, 0.0  ;;  %v404_v10 = vpop.f32.mrb[1].mxu1 }
 0x121   :  { %v885_v17 = vmax.f32 %v869_v11, 0.0 }
 0x122   :  { %v917_v14 = vpack.c.bf16 %v887_v13, %v886_v12  ;;  %v2064_v13 = vpop.f32.mrb[2].mxu1 }
 0x123   :  { %v916_v19 = vpack.c.bf16 %v885_v17, %v884_v16  ;;  %v2099_v20 = vpop.f32.mrb[4].mxu0  ;;  %v407_v17 = vpop.f32.mrb[3].mxu1 }
 0x124   :  { %v874_v21 = vadd.f32 %v2099_v20, %v821_v2  ;;  %v645_v22 = vpop.f32.mrb[5].mxu0 }
 0x125   :  { %v872_v23 = vadd.f32 %v811_v0, %v645_v22  ;;  %v2100_v24 = vpop.f32.mrb[6].mxu0  ;;  %2125 = vmatprep.subr.bf16.mxu1 %v916_v19 }
 0x126   :  { %v875_v25 = vadd.f32 %v2100_v24, %v826_v6  ;;  %v648_v26 = vpop.f32.mrb[7].mxu0  ;;  %2126 = vmatpush3.bf16.msra.mxu1 %v916_v19  ;;  %v890_v29 = vmax.f32 %v874_v21, 0.0  ;;  %v2292_v6 = vld [vmem:[%s3096_s5 + $0x18] sm:$0xff]   ;;  %v2067_v19 = vpop.f32.mrb[4].mxu1 }
 0x127   :  { %v873_v28 = vadd.f32 %v816_v1, %v648_v26  ;;  %2127 = vmatprep.subr.bf16.mxu1 %v917_v14  ;;  %v888_v32 = vmax.f32 %v872_v23, 0.0  ;;  %v420_v22 = vpop.f32.mrb[5].mxu1 }
 0x128   :  { %v891_v30 = vmax.f32 %v875_v25, 0.0  ;;  %v2068_v25 = vpop.f32.mrb[6].mxu1 }
 0x129   :  { %v889_v33 = vmax.f32 %v873_v28, 0.0  ;;  %v423_v28 = vpop.f32.mrb[7].mxu1 }
 0x12a   :  { %v919_v34 = vpack.c.bf16 %v891_v30, %v890_v29  ;;  %2128 = vmatpush3.bf16.msra.mxu1 %v917_v14 }
 0x12b   :  { %v918_v35 = vpack.c.bf16 %v889_v33, %v888_v32  ;;  %v2103_v36 = vpop.f32.mrb[8].mxu0 }
 0x12c   :  { %v878_v37 = vadd.f32 %v2103_v36, %v841_v27  ;;  %v661_v38 = vpop.f32.mrb[9].mxu0 }
 0x12d   :  { %v876_v40 = vadd.f32 %v831_v15, %v661_v38  ;;  %v2104_v41 = vpop.f32.mrb[10].mxu0  ;;  %2129 = vmatprep.subr.bf16.mxu1 %v918_v35 }
 0x12e   :  { %v879_v42 = vadd.f32 %v2104_v41, %v846_v31  ;;  %v664_v43 = vpop.f32.mrb[11].mxu0  ;;  %2130 = vmatpush3.bf16.msra.mxu1 %v918_v35  ;;  %v894_v46 = vmax.f32 %v878_v37, 0.0  ;;  %v2071_v31 = vpop.f32.mrb[8].mxu1 }
 0x12f   :  { %v877_v45 = vadd.f32 %v836_v18, %v664_v43  ;;  %2131 = vmatprep.subr.bf16.mxu1 %v919_v34  ;;  %v892_v48 = vmax.f32 %v876_v40, 0.0 }
 0x130   :  { %v895_v47 = vmax.f32 %v879_v42, 0.0 }
 0x131   :  { %v893_v49 = vmax.f32 %v877_v45, 0.0 }
 0x132   :  { %v921_v50 = vpack.c.bf16 %v895_v47, %v894_v46  ;;  %2132 = vmatpush3.bf16.msra.mxu1 %v919_v34  ;;  %v436_v34 = vpop.f32.mrb[9].mxu1 }
 0x133   :  { %v920_v52 = vpack.c.bf16 %v893_v49, %v892_v48  ;;  %v2107_v53 = vpop.f32.mrb[12].mxu0  ;;  %v2072_v37 = vpop.f32.mrb[10].mxu1 }
 0x134   :  { %v882_v54 = vadd.f32 %v2107_v53, %v861_v51  ;;  %v677_v55 = vpop.f32.mrb[13].mxu0  ;;  %v439_v40 = vpop.f32.mrb[11].mxu1 }
 0x135   :  { %v880_v57 = vadd.f32 %v851_v39, %v677_v55  ;;  %v2108_v58 = vpop.f32.mrb[14].mxu0  ;;  %2133 = vmatprep.subr.bf16.mxu1 %v920_v52  ;;  %v2075_v43 = vpop.f32.mrb[12].mxu1  ;;  %v2293_v55 = vld [vmem:[%s3097_s7] sm:$0xff]  }
 0x136   :  { %v883_v59 = vadd.f32 %v2108_v58, %v866_v56  ;;  %v680_v60 = vpop.f32.mrb[15].mxu0  ;;  %2134 = vmatpush3.bf16.msra.mxu1 %v920_v52  ;;  %v898_v62 = vmax.f32 %v882_v54, 0.0  ;;  %v452_v46 = vpop.f32.mrb[13].mxu1 }
 0x137   :  { %v881_v61 = vadd.f32 %v856_v44, %v680_v60  ;;  %2135 = vmatprep.subr.bf16.mxu1 %v921_v50  ;;  %v896_v0 = vmax.f32 %v880_v57, 0.0  ;;  %v2076_v49 = vpop.f32.mrb[14].mxu1  ;;  %v943_v56 = vpop.permute.xlu0 %942 }
 0x138   :  { %v899_v63 = vmax.f32 %v883_v59, 0.0  ;;  %v455_v52 = vpop.f32.mrb[15].mxu1  ;;  %v948_v57 = vpop.permute.xlu1 %947 }
 0x139   :  { %v897_v1 = vmax.f32 %v881_v61, 0.0 }
 0x13a   :  { %v923_v2 = vpack.c.bf16 %v899_v63, %v898_v62  ;;  %2136 = vmatpush3.bf16.msra.mxu1 %v921_v50 }
 0x13b   :  { %v922_v3 = vpack.c.bf16 %v897_v1, %v896_v0  ;;  %v2111_v8 = vpop.f32.mrb[16].mxu0  ;;  %v953_v58 = vpop.permute.xlu0 %952 }
 0x13c   :  { %v2960_v9 = vmul.f32 %v2111_v8, %v2063_v7  ;;  %v693_v11 = vpop.f32.mrb[17].mxu0  ;;  %v958_v59 = vpop.permute.xlu1 %957 }
 0x13d   :  { %2137 = vmatprep.subr.bf16.mxu1 %v922_v3  ;;  %v2962_v12 = vmul.f32 %v693_v11, %v404_v10  ;;  %v2112_v15 = vpop.f32.mrb[18].mxu0 }
 0x13e   :  { %2138 = vmatpush3.bf16.msra.mxu1 %v922_v3  ;;  %v2964_v16 = vmul.f32 %v2112_v15, %v2064_v13  ;;  %v696_v14 = vpop.f32.mrb[19].mxu0 }
 0x13f   :  { %2139 = vmatprep.subr.bf16.mxu1 %v923_v2  ;;  %v2966_v18 = vmul.f32 %v696_v14, %v407_v17  ;;  %v963_v63 = vpop.permute.xlu0 %962 }
 0x142   :  { %2140 = vmatpush3.bf16.msra.mxu1 %v923_v2 }
 0x143   :  { %v2115_v20 = vpop.f32.mrb[20].mxu0  ;;  %v973_v13 = vpop.permute.xlu0 %972 }
 0x144   :  { %v2968_v21 = vmul.f32 %v2115_v20, %v2067_v19  ;;  %v709_v23 = vpop.f32.mrb[21].mxu0 }
 0x145   :  { %2142 = vmatmul.mubr.bf16.vlgmr.msra.gmra.mrb[16].mxu1 %v2290_v4  ;;  %v2970_v24 = vmul.f32 %v709_v23, %v420_v22  ;;  %v2116_v26 = vpop.f32.mrb[22].mxu0  ;;  %v968_v4 = vpop.permute.xlu1 %967 }
 0x146   :  { %2145 = vmatprep.mubr.bf16.mxu1 %v2291_v5  ;;  %v2972_v27 = vmul.f32 %v2116_v26, %v2068_v25  ;;  %v712_v29 = vpop.f32.mrb[23].mxu0 }
 0x147   :  { %v2974_v30 = vmul.f32 %v712_v29, %v423_v28 }
 0x149   :  { %v978_v20 = vpop.permute.xlu1 %977 }
 0x14b   :  { %v2119_v32 = vpop.f32.mrb[24].mxu0 }
 0x14c   :  { %v2976_v33 = vmul.f32 %v2119_v32, %v2071_v31  ;;  %v725_v35 = vpop.f32.mrb[25].mxu0 }
 0x14d   :  { %2146 = vmatmul.mubr.bf16.gmra.mrb[20].mxu1 %v2292_v6  ;;  %v2978_v36 = vmul.f32 %v725_v35, %v436_v34  ;;  %v2120_v38 = vpop.f32.mrb[26].mxu0 }
 0x14e   :  { %v2980_v39 = vmul.f32 %v2120_v38, %v2072_v37  ;;  %v728_v41 = vpop.f32.mrb[27].mxu0  ;;  %2157 = vmatprep.mubr.msk.bf16.mxu1 %vm1233_vm0, %v2293_v55  ;;  %v2294_v38 = vld [vmem:[%s3097_s7 + $0x8] sm:$0xff]  }
 0x14f   :  { %v2982_v42 = vmul.f32 %v728_v41, %v439_v40  ;;  %v2295_v40 = vld [vmem:[%s3097_s7 + $0x10] sm:$0xff]   ;;  %v2296_v41 = vld [vmem:[%s3097_s7 + $0x18] sm:$0xff]  }
 0x153   :  { %v2123_v44 = vpop.f32.mrb[28].mxu0 }
 0x154   :  { %v2984_v45 = vmul.f32 %v2123_v44, %v2075_v43  ;;  %v741_v47 = vpop.f32.mrb[29].mxu0  ;;  %v2297_v43 = vld [vmem:[%s3097_s7 + $0x20] sm:$0xff]   ;;  %v2298_v44 = vld [vmem:[%s3097_s7 + $0x28] sm:$0xff]  }
 0x155   :  { %v2986_v48 = vmul.f32 %v741_v47, %v452_v46  ;;  %v2124_v50 = vpop.f32.mrb[30].mxu0  ;;  %v2299_v46 = vld [vmem:[%s3097_s7 + $0x30] sm:$0xff]   ;;  %v2300_v47 = vld [vmem:[%s3097_s7 + $0x38] sm:$0xff]  }
 0x156   :  { %v2988_v51 = vmul.f32 %v2124_v50, %v2076_v49  ;;  %v744_v53 = vpop.f32.mrb[31].mxu0  ;;  %v2301_v49 = vld [vmem:[%s3098_s9] sm:$0xff]   ;;  %v2302_v50 = vld [vmem:[%s3098_s9 + $0x10] sm:$0xff]  }
 0x157   :  { %v2990_v54 = vmul.f32 %v744_v53, %v455_v52  ;;  %2189 = vmatprep.mubr.bf16.mxu0 %v2301_v49  ;;  %v1116_v52 = vpop.permute.xlu0 %1115  ;;  %v1121_v53 = vpop.permute.xlu1 %1120 }
 0x15b   :  { %v1126_v55 = vpop.permute.xlu0 %1125 }
 0x218   :  { %v2143_v60 = vpop.f32.mrb[16].mxu1 }
 0x219   :  { %v1047_v61 = vadd.f32 %v2143_v60, %v953_v58  ;;  %v1038_v62 = vpop.f32.mrb[17].mxu1 }
 0x21a   :  { %v1039_v0 = vadd.f32 %v1038_v62, %v943_v56  ;;  %v2144_v1 = vpop.f32.mrb[18].mxu1  ;;  %v1131_v56 = vpop.permute.xlu1 %1130 }
 0x21b   :  { %v1050_v2 = vadd.f32 %v2144_v1, %v958_v59  ;;  %v1041_v3 = vpop.f32.mrb[19].mxu1  ;;  %v1071_v6 = vmax.f32 %v1047_v61, 0.0 }
 0x21c   :  { %v1042_v5 = vadd.f32 %v1041_v3, %v948_v57  ;;  %v1069_v8 = vmax.f32 %v1039_v0, 0.0  ;;  %v1136_v57 = vpop.permute.xlu0 %1135 }
 0x21d   :  { %v1072_v7 = vmax.f32 %v1050_v2, 0.0 }
 0x21e   :  { %v1070_v10 = vmax.f32 %v1042_v5, 0.0  ;;  %v1141_v58 = vpop.permute.xlu1 %1140 }
 0x21f   :  { %v1078_v11 = vpack.c.bf16 %v1072_v7, %v1071_v6 }
 0x220   :  { %v1077_v15 = vpack.c.bf16 %v1070_v10, %v1069_v8  ;;  %v2147_v17 = vpop.f32.mrb[20].mxu1  ;;  %v1146_v59 = vpop.permute.xlu0 %1145 }
 0x221   :  { %v1063_v14 = vadd.f32 %v2147_v17, %v973_v13  ;;  %v1054_v19 = vpop.f32.mrb[21].mxu1 }
 0x222   :  { %v1055_v22 = vadd.f32 %v1054_v19, %v963_v63  ;;  %v2148_v23 = vpop.f32.mrb[22].mxu1  ;;  %2149 = vmatprep.subr.bf16.mxu1 %v1077_v15  ;;  %v1151_v63 = vpop.permute.xlu1 %1150 }
 0x223   :  { %v1066_v25 = vadd.f32 %v2148_v23, %v978_v20  ;;  %v1057_v26 = vpop.f32.mrb[23].mxu1  ;;  %2150 = vmatpush3.bf16.msra.mxu1 %v1077_v15  ;;  %v1075_v29 = vmax.f32 %v1063_v14, 0.0 }
 0x224   :  { %v1058_v28 = vadd.f32 %v1057_v26, %v968_v4  ;;  %2151 = vmatprep.subr.bf16.mxu1 %v1078_v11  ;;  %v1073_v32 = vmax.f32 %v1055_v22, 0.0  ;;  %v1156_v10 = vpop.permute.xlu0 %1155 }
 0x225   :  { %v1076_v31 = vmax.f32 %v1066_v25, 0.0 }
 0x226   :  { %v1074_v34 = vmax.f32 %v1058_v28, 0.0  ;;  %v1161_v17 = vpop.permute.xlu1 %1160 }
 0x227   :  { %v1080_v35 = vpack.c.bf16 %v1076_v31, %v1075_v29  ;;  %2152 = vmatpush3.bf16.msra.mxu1 %v1078_v11 }
 0x228   :  { %v1079_v37 = vpack.c.bf16 %v1074_v34, %v1073_v32  ;;  %v1166_v32 = vpop.permute.xlu0 %1165 }
 0x22a   :  { %2153 = vmatprep.subr.bf16.mxu1 %v1079_v37 }
 0x22b   :  { %2154 = vmatpush3.bf16.msra.mxu1 %v1079_v37 }
 0x22c   :  { %2155 = vmatprep.subr.bf16.mxu1 %v1080_v35 }
 0x22f   :  { %2156 = vmatpush3.bf16.msra.mxu1 %v1080_v35 }
 0x232   :  { %2158 = vmatmul.mubr.msk.bf16.vlgmr.msra.gmra.mrb[24].mxu1 %vm1233_vm0, %v2294_v38 }
 0x233   :  { %2161 = vmatprep.mubr.msk.bf16.mxu1 %vm1233_vm0, %v2295_v40 }
 0x23a   :  { %2162 = vmatmul.mubr.msk.bf16.gmra.mrb[28].mxu1 %vm1233_vm0, %v2296_v41 }
 0x23b   :  { %2165 = vmatprep.mubr.msk.bf16.mxu1 %vm1233_vm0, %v2297_v43 }
 0x242   :  { %2166 = vmatmul.mubr.msk.bf16.gmra.mrb[32].mxu1 %vm1233_vm0, %v2298_v44 }
 0x243   :  { %2169 = vmatprep.mubr.msk.bf16.mxu1 %vm1233_vm0, %v2299_v46 }
 0x24a   :  { %2170 = vmatmul.mubr.msk.bf16.gmra.mrb[36].mxu1 %vm1233_vm0, %v2300_v47 }
 0x24b   :  { %2193 = vmatprep.mubr.bf16.mxu1 %v2302_v50 }
 0x305   :  { %v2159_v60 = vpop.f32.mrb[24].mxu1 }
 0x306   :  { %v1301_v61 = vadd.f32 %v2159_v60, %v1126_v55  ;;  %v1292_v62 = vpop.f32.mrb[25].mxu1 }
 0x307   :  { %v1293_v0 = vadd.f32 %v1292_v62, %v1116_v52  ;;  %v2160_v1 = vpop.f32.mrb[26].mxu1 }
 0x308   :  { %v1357_v2 = vmax.f32 %v1301_v61, 0.0  ;;  %v1304_v3 = vadd.f32 %v2160_v1, %v1131_v56  ;;  %v1295_v4 = vpop.f32.mrb[27].mxu1 }
 0x309   :  { %v1355_v5 = vmax.f32 %v1293_v0, 0.0  ;;  %v1296_v6 = vadd.f32 %v1295_v4, %v1121_v53 }
 0x30a   :  { %v1373_v7 = vadd.f32 %v1357_v2, %v2960_v9  ;;  %v1358_v8 = vmax.f32 %v1304_v3, 0.0 }
 0x30b   :  { %v1371_v11 = vadd.f32 %v1355_v5, %v2962_v12  ;;  %v1356_v13 = vmax.f32 %v1296_v6, 0.0 }
 0x30c   :  { %v1374_v15 = vadd.f32 %v1358_v8, %v2964_v16 }
 0x30d   :  { %v1372_v14 = vadd.f32 %v1356_v13, %v2966_v18  ;;  %v2163_v19 = vpop.f32.mrb[28].mxu1  ;;  %v1171_v18 = vpop.permute.xlu1 %1170 }
 0x30e   :  { %v1388_v20 = vpack.c.bf16 %v1374_v15, %v1373_v7  ;;  %v1317_v22 = vadd.f32 %v2163_v19, %v1146_v59  ;;  %v1308_v23 = vpop.f32.mrb[29].mxu1 }
 0x30f   :  { %v1387_v25 = vpack.c.bf16 %v1372_v14, %v1371_v11  ;;  %v1309_v26 = vadd.f32 %v1308_v23, %v1136_v57  ;;  %v2164_v28 = vpop.f32.mrb[30].mxu1  ;;  %v2308_v23 = vld [vmem:[%s3098_s9 + $0x38] sm:$0xff]  }
 0x310   :  { %v1361_v29 = vmax.f32 %v1317_v22, 0.0  ;;  %v1320_v31 = vadd.f32 %v2164_v28, %v1151_v63  ;;  %v1311_v9 = vpop.f32.mrb[31].mxu1  ;;  %v2307_v22 = vld [vmem:[%s3098_s9 + $0x30] sm:$0xff]  }
 0x311   :  { %v1359_v34 = vmax.f32 %v1309_v26, 0.0  ;;  %v1312_v35 = vadd.f32 %v1311_v9, %v1141_v58  ;;  %2173 = vmatprep.subr.bf16.mxu0 %v1387_v25  ;;  %2221 = vmatprep.subr.bf16.mxu1 %v1387_v25  ;;  %v1181_v56 = vpop.permute.xlu1 %1180 }
 0x312   :  { %v1377_v12 = vadd.f32 %v1361_v29, %v2968_v21  ;;  %v1362_v16 = vmax.f32 %v1320_v31, 0.0  ;;  %2174 = vmatpush3.bf16.msra.mxu0 %v1387_v25  ;;  %2229 = vmatpush3.bf16.msra.mxu1 %v1387_v25  ;;  %v1176_v21 = vpop.permute.xlu0 %1175 }
 0x313   :  { %v1375_v37 = vadd.f32 %v1359_v34, %v2970_v24  ;;  %v1360_v38 = vmax.f32 %v1312_v35, 0.0  ;;  %2175 = vmatprep.subr.bf16.mxu0 %v1388_v20  ;;  %2222 = vmatprep.subr.bf16.mxu1 %v1388_v20 }
 0x314   :  { %v1378_v40 = vadd.f32 %v1362_v16, %v2972_v27 }
 0x315   :  { %v1376_v41 = vadd.f32 %v1360_v38, %v2974_v30  ;;  %v2167_v43 = vpop.f32.mrb[32].mxu1 }
 0x316   :  { %v1390_v44 = vpack.c.bf16 %v1378_v40, %v1377_v12  ;;  %v1333_v46 = vadd.f32 %v2167_v43, %v1166_v32  ;;  %v1324_v47 = vpop.f32.mrb[33].mxu1  ;;  %2176 = vmatpush3.bf16.msra.mxu0 %v1388_v20  ;;  %2230 = vmatpush3.bf16.msra.mxu1 %v1388_v20  ;;  %v1186_v62 = vpop.permute.xlu0 %1185 }
 0x317   :  { %v1389_v49 = vpack.c.bf16 %v1376_v41, %v1375_v37  ;;  %v1325_v50 = vadd.f32 %v1324_v47, %v1156_v10  ;;  %v2168_v52 = vpop.f32.mrb[34].mxu1 }
 0x318   :  { %v1365_v53 = vmax.f32 %v1333_v46, 0.0  ;;  %v1336_v55 = vadd.f32 %v2168_v52, %v1171_v18  ;;  %v1327_v24 = vpop.f32.mrb[35].mxu1 }
 0x319   :  { %v1363_v57 = vmax.f32 %v1325_v50, 0.0  ;;  %v1328_v58 = vadd.f32 %v1327_v24, %v1161_v17  ;;  %2177 = vmatprep.subr.bf16.mxu0 %v1389_v49  ;;  %2223 = vmatprep.subr.bf16.mxu1 %v1389_v49 }
 0x31a   :  { %v1381_v27 = vadd.f32 %v1365_v53, %v2976_v33  ;;  %v1366_v30 = vmax.f32 %v1336_v55, 0.0  ;;  %2178 = vmatpush3.bf16.msra.mxu0 %v1389_v49  ;;  %2231 = vmatpush3.bf16.msra.mxu1 %v1389_v49  ;;  %v1191_v33 = vpop.permute.xlu1 %1190  ;;  %v1430_v25 = vpop.permute.xlu0 %1429 }
 0x31b   :  { %v1379_v59 = vadd.f32 %v1363_v57, %v2978_v36  ;;  %v1364_v60 = vmax.f32 %v1328_v58, 0.0  ;;  %2179 = vmatprep.subr.bf16.mxu0 %v1390_v44  ;;  %2224 = vmatprep.subr.bf16.mxu1 %v1390_v44 }
 0x31c   :  { %v1382_v61 = vadd.f32 %v1366_v30, %v2980_v39 }
 0x31d   :  { %v1380_v63 = vadd.f32 %v1364_v60, %v2982_v42  ;;  %v2171_v0 = vpop.f32.mrb[36].mxu1 }
 0x31e   :  { %v1392_v1 = vpack.c.bf16 %v1382_v61, %v1381_v27  ;;  %v1349_v2 = vadd.f32 %v2171_v0, %v1186_v62  ;;  %v1340_v3 = vpop.f32.mrb[37].mxu1  ;;  %2180 = vmatpush3.bf16.msra.mxu0 %v1390_v44  ;;  %2232 = vmatpush3.bf16.msra.mxu1 %v1390_v44  ;;  %v1435_v26 = vpop.permute.xlu1 %1434 }
 0x31f   :  { %v1391_v4 = vpack.c.bf16 %v1380_v63, %v1379_v59  ;;  %v1341_v5 = vadd.f32 %v1340_v3, %v1176_v21  ;;  %v2172_v6 = vpop.f32.mrb[38].mxu1  ;;  %v1440_v28 = vpop.permute.xlu0 %1439 }
 0x320   :  { %v1369_v7 = vmax.f32 %v1349_v2, 0.0  ;;  %v1352_v36 = vadd.f32 %v2172_v6, %v1191_v33  ;;  %v1343_v8 = vpop.f32.mrb[39].mxu1 }
 0x321   :  { %v1367_v10 = vmax.f32 %v1341_v5, 0.0  ;;  %v1344_v11 = vadd.f32 %v1343_v8, %v1181_v56  ;;  %2181 = vmatprep.subr.bf16.mxu0 %v1391_v4  ;;  %2225 = vmatprep.subr.bf16.mxu1 %v1391_v4 }
 0x322   :  { %v1385_v39 = vadd.f32 %v1369_v7, %v2984_v45  ;;  %v1370_v42 = vmax.f32 %v1352_v36, 0.0  ;;  %2182 = vmatpush3.bf16.msra.mxu0 %v1391_v4  ;;  %2233 = vmatpush3.bf16.msra.mxu1 %v1391_v4  ;;  %v2303_v45 = vld [vmem:[%s3098_s9 + $0x8] sm:$0xff]   ;;  %v1445_v29 = vpop.permute.xlu1 %1444 }
 0x323   :  { %v1383_v13 = vadd.f32 %v1367_v10, %v2986_v48  ;;  %v1368_v15 = vmax.f32 %v1344_v11, 0.0  ;;  %2183 = vmatprep.subr.bf16.mxu0 %v1392_v1  ;;  %2226 = vmatprep.subr.bf16.mxu1 %v1392_v1  ;;  %v2304_v48 = vld [vmem:[%s3098_s9 + $0x18] sm:$0xff]   ;;  %v1450_v31 = vpop.permute.xlu0 %1449 }
 0x324   :  { %v1386_v17 = vadd.f32 %v1370_v42, %v2988_v51  ;;  %v2305_v51 = vld [vmem:[%s3098_s9 + $0x20] sm:$0xff]  }
 0x325   :  { %v1384_v14 = vadd.f32 %v1368_v15, %v2990_v54  ;;  %v2306_v54 = vld [vmem:[%s3098_s9 + $0x28] sm:$0xff]  }
 0x326   :  { %v1394_v19 = vpack.c.bf16 %v1386_v17, %v1385_v39  ;;  %2184 = vmatpush3.bf16.msra.mxu0 %v1392_v1  ;;  %2234 = vmatpush3.bf16.msra.mxu1 %v1392_v1  ;;  %v1455_v9 = vpop.permute.xlu1 %1454 }
 0x327   :  { %v1393_v20 = vpack.c.bf16 %v1384_v14, %v1383_v13  ;;  %v1460_v32 = vpop.permute.xlu0 %1459 }
 0x329   :  { %2185 = vmatprep.subr.bf16.mxu0 %v1393_v20  ;;  %2227 = vmatprep.subr.bf16.mxu1 %v1393_v20 }
 0x32a   :  { %2186 = vmatpush3.bf16.msra.mxu0 %v1393_v20  ;;  %2235 = vmatpush3.bf16.msra.mxu1 %v1393_v20  ;;  %v1465_v34 = vpop.permute.xlu1 %1464 }
 0x32b   :  { %2187 = vmatprep.subr.bf16.mxu0 %v1394_v19  ;;  %2228 = vmatprep.subr.bf16.mxu1 %v1394_v19  ;;  %v1470_v35 = vpop.permute.xlu0 %1469 }
 0x32e   :  { %2188 = vmatpush3.bf16.msra.mxu0 %v1394_v19  ;;  %2236 = vmatpush3.bf16.msra.mxu1 %v1394_v19  ;;  %v1475_v12 = vpop.permute.xlu1 %1474 }
 0x32f   :  { %v1480_v24 = vpop.permute.xlu0 %1479 }
 0x331   :  { %2190 = vmatmul.mubr.bf16.vlgmr.msra.gmra.mrb[32].mxu0 %v2303_v45  ;;  %2194 = vmatmul.mubr.bf16.vlgmr.msra.gmra.mrb[40].mxu1 %v2304_v48 }
 0x332   :  { %2197 = vmatprep.mubr.bf16.mxu1 %v2305_v51  ;;  %v1485_v58 = vpop.permute.xlu1 %1484 }
 0x333   :  { %v1490_v62 = vpop.permute.xlu0 %1489 }
 0x336   :  { %v1495_v2 = vpop.permute.xlu1 %1494 }
 0x337   :  { %v1500_v7 = vpop.permute.xlu0 %1499 }
 0x339   :  { %2198 = vmatmul.mubr.bf16.gmra.mrb[44].mxu1 %v2306_v54 }
 0x33a   :  { %2201 = vmatprep.mubr.bf16.mxu1 %v2307_v22  ;;  %v1505_v8 = vpop.permute.xlu1 %1504 }
 0x341   :  { %2202 = vmatmul.mubr.bf16.gmra.mrb[48].mxu1 %v2308_v23 }
 0x404   :  { %v2191_v16 = vpop.f32.mrb[32].mxu0  ;;  %v2195_v18 = vpop.f32.mrb[40].mxu1 }
 0x405   :  { %v1589_v37 = vpop.f32.mrb[33].mxu0  ;;  %v1605_v38 = vpop.f32.mrb[41].mxu1  ;;  %v1598_v43 = vadd.f32 %v2191_v16, %v1440_v28  ;;  %v1614_v44 = vadd.f32 %v2195_v18, %v1460_v32 }
 0x406   :  { %v2192_v40 = vpop.f32.mrb[34].mxu0  ;;  %v2196_v41 = vpop.f32.mrb[42].mxu1  ;;  %v1590_v50 = vadd.f32 %v1589_v37, %v1430_v25  ;;  %v1606_v52 = vadd.f32 %v1605_v38, %v1450_v31 }
 0x407   :  { %v1601_v46 = vadd.f32 %v2192_v40, %v1445_v29  ;;  %v1617_v47 = vadd.f32 %v2196_v41, %v1465_v34  ;;  %v1592_v21 = vpop.f32.mrb[35].mxu0  ;;  %v1608_v49 = vpop.f32.mrb[43].mxu1 }
 0x408   :  { %v1593_v53 = vadd.f32 %v1592_v21, %v1435_v26  ;;  %v1609_v55 = vadd.f32 %v1608_v49, %v1455_v9 }
 0x409   :  { %v1902_v56 = vpack.c.bf16 %v1601_v46, %v1598_v43  ;;  %v1912_v57 = vpack.c.bf16 %v1617_v47, %v1614_v44 }
 0x40a   :  { %v1897_v27 = vpack.c.bf16 %v1593_v53, %v1590_v50  ;;  %v1907_v30 = vpack.c.bf16 %v1609_v55, %v1606_v52 }
 0x40b   :  { %1934 = vst [vmem:[%s3099_s11 + $0x8] sm:$0xff] %v1902_v56   ;;  %1936 = vst [vmem:[%s3099_s11 + $0x18] sm:$0xff] %v1912_v57  }
 0x40c   :  { %1898 = vst [vmem:[%s3099_s11] sm:$0xff] %v1897_v27   ;;  %1935 = vst [vmem:[%s3099_s11 + $0x10] sm:$0xff] %v1907_v30   ;;  %v2199_v59 = vpop.f32.mrb[44].mxu1 }
 0x40d   :  { %v1621_v60 = vpop.f32.mrb[45].mxu1  ;;  %v1630_v63 = vadd.f32 %v2199_v59, %v1480_v24 }
 0x40e   :  { %v2200_v61 = vpop.f32.mrb[46].mxu1  ;;  %v1622_v3 = vadd.f32 %v1621_v60, %v1470_v35 }
 0x40f   :  { %v1633_v0 = vadd.f32 %v2200_v61, %v1485_v58  ;;  %v1624_v1 = vpop.f32.mrb[47].mxu1 }
 0x410   :  { %v1625_v33 = vadd.f32 %v1624_v1, %v1475_v12 }
 0x411   :  { %v1922_v4 = vpack.c.bf16 %v1633_v0, %v1630_v63 }
 0x412   :  { %v1917_v5 = vpack.c.bf16 %v1625_v33, %v1622_v3 }
 0x413   :  { %1938 = vst [vmem:[%s3099_s11 + $0x28] sm:$0xff] %v1922_v4  }
 0x414   :  { %1937 = vst [vmem:[%s3099_s11 + $0x20] sm:$0xff] %v1917_v5   ;;  %v2203_v6 = vpop.f32.mrb[48].mxu1 }
 0x415   :  { %v1637_v36 = vpop.f32.mrb[49].mxu1  ;;  %v1646_v11 = vadd.f32 %v2203_v6, %v1500_v7 }
 0x416   :  { %v2204_v10 = vpop.f32.mrb[50].mxu1  ;;  %v1638_v13 = vadd.f32 %v1637_v36, %v1490_v62 }
 0x417   :  { %v1649_v39 = vadd.f32 %v2204_v10, %v1505_v8  ;;  %v1640_v42 = vpop.f32.mrb[51].mxu1 }
 0x418   :  { %v1641_v15 = vadd.f32 %v1640_v42, %v1495_v2 }
 0x419   :  { %v1932_v17 = vpack.c.bf16 %v1649_v39, %v1646_v11 }
 0x41a   :  { %v1927_v14 = vpack.c.bf16 %v1641_v15, %v1638_v13 }
 0x41b   :  { %1940 = vst [vmem:[%s3099_s11 + $0x38] sm:$0xff] %v1932_v17  }
 0x41c   :  { %1939 = vst [vmem:[%s3099_s11 + $0x30] sm:$0xff] %v1927_v14  }

</bundles_post_ra>
